<compile_context>
chip_gen: v6e
topology: v6e:2x2x1
jax: 0.10.0
libtpu: 0.0.40
codegen_flags: <defaults>
</compile_context>

<pallas_src>
import jax
import jax.numpy as jnp
from jax.experimental import pallas as pl
from jax.experimental.pallas import tpu as pltpu

LANE = 128
SUB = 8
BLKQ = 32                          # row-block quantum: int8 keep-mask native tile is (32,128)
_MAX_LANE_WIDTH = 4096             # widest lane-dense last dim considered
_TARGET_TILE_BYTES = 6 << 20       # ~6 MiB of x per block (double-buffered total ~27 MiB f32)
_MIN_GRID_STEPS = 4                # let v7x (2 TCs) shard the grid; harmless on v5e/v6e
_VMEM_LIMIT_BYTES = 48 * 1024 * 1024


def _mask_kernel(x_ref, keep_ref, o_ref):
    # keep == 1 -> pass x through, keep == 0 -> exact zero (matches the torch assignment;
    # unlike x * keep this gives exact zeros even where x holds NaN/Inf).
    x = x_ref[...]
    o_ref[...] = jnp.where(keep_ref[...] != 0, x, jnp.zeros_like(x))


def _pick_layout(n, itemsize):
    """Pick (lane width w, rows r, row block blk) for a flat length-n tensor.

    Returns None if no multiple-of-128 width <= _MAX_LANE_WIDTH divides n."""
    cap = min(_MAX_LANE_WIDTH, (n // LANE) * LANE)
    w = 0
    for cand in range(cap, 0, -LANE):
        if n % cand == 0:
            w = cand
            break
    if w == 0:
        return None
    r = n // w

    if r <= BLKQ:
        # One block covering the full row extent (block == full array dim: legal).
        return w, r, r

    # ~_TARGET_TILE_BYTES of x per block, rounded to 32-row multiples.
    blk = (_TARGET_TILE_BYTES // (w * itemsize)) // BLKQ * BLKQ
    blk = max(BLKQ, min((r // BLKQ) * BLKQ, blk))
    # Prefer a nearby block that divides r exactly (unmasked last block), but don't
    # shrink below half the target; Pallas masks a ragged last block otherwise.
    lo = max(BLKQ, blk // 2)
    for cand in range(blk, lo - 1, -BLKQ):
        if r % cand == 0:
            blk = cand
            break
    # Keep at least _MIN_GRID_STEPS grid steps so the "parallel" grid axis can be
    # sharded across both v7x TensorCores.
    while blk > BLKQ and pl.cdiv(r, blk) < _MIN_GRID_STEPS:
        blk = max(BLKQ, (blk // 2) // BLKQ * BLKQ)
    return w, r, blk


class MaskLayer:
    """Pallas equivalent of the PyTorch MaskLayer module.

    mask_index is fixed at construction (like the nn.Module attribute), so the keep-mask
    scatter and its lane-dense reshape are built once per flat length and cached; the
    per-call HBM traffic stays at the read-x + read-mask + write-out minimum."""

    def __init__(self, mask_index):
        # TODO(synk): out-of-range entries in mask_index are silently dropped by the JAX
        # scatter, whereas PyTorch indexing would raise.
        self.mask_index = jnp.asarray(mask_index, dtype=jnp.int32).reshape(-1)
        self._plans = {}   # (n, itemsize) -> (kind, layout, keep2d, keep_tail_bool)

    def _plan(self, n, itemsize):
        key = (n, itemsize)
        plan = self._plans.get(key)
        if plan is not None:
            return plan

        keep = jnp.zeros((n,), dtype=jnp.int8).at[self.mask_index].set(1)
        layout = _pick_layout(n, itemsize)
        if layout is not None:
            w, r, blk = layout
            plan = ("full", (w, r, blk), keep.reshape(r, w), None)
        else:
            # No multiple-of-128 width divides n: run the kernel on the largest
            # 1024-aligned prefix, fix the short tail with a plain select outside
            # (no whole-array pad + slice copies).
            n_main = (n // (SUB * LANE)) * (SUB * LANE)
            if n_main == 0:
                plan = ("tiny", None, None, keep != 0)
            else:
                w, r, blk = _pick_layout(n_main, itemsize)
                plan = ("split", (w, r, blk), keep[:n_main].reshape(r, w), keep[n_main:] != 0)

        self._plans[key] = plan
        return plan

    def __call__(self, x):
        orig_shape = x.shape
        dtype = x.dtype
        flat = x.reshape(-1)                     # row-major, same flat order as torch .view(1, -1)
        n = flat.shape[0]
        itemsize = jnp.dtype(dtype).itemsize

        kind, layout, keep2d, keep_tail = self._plan(n, itemsize)

        if kind == "tiny":
            # Too small / no lane-dense layout at all: a single select is cheaper than a kernel.
            return jnp.where(keep_tail, flat, jnp.zeros((), dtype)).reshape(orig_shape)

        w, r, blk = layout
        n_main = r * w
        x2d = (flat[:n_main] if kind == "split" else flat).reshape(r, w)

        grid = (pl.cdiv(r, blk),)
        out2d = pl.pallas_call(
            _mask_kernel,
            out_shape=jax.ShapeDtypeStruct((r, w), dtype),
            grid=grid,
            in_specs=[
                pl.BlockSpec((blk, w), lambda i: (i, 0)),
                pl.BlockSpec((blk, w), lambda i: (i, 0)),
            ],
            out_specs=pl.BlockSpec((blk, w), lambda i: (i, 0)),
            compiler_params=pltpu.CompilerParams(
                dimension_semantics=("parallel",),
                vmem_limit_bytes=_VMEM_LIMIT_BYTES,
            ),
        )(x2d, keep2d)

        out_flat = out2d.reshape(-1)
        if kind == "split":
            tail = jnp.where(keep_tail, flat[n_main:], jnp.zeros((), dtype))
            out_flat = jnp.concatenate([out_flat, tail])
        return out_flat.reshape(orig_shape)


def mask_layer(x, mask_index):
    """One-shot functional wrapper (prefer MaskLayer for repeated calls)."""
    return MaskLayer(mask_index)(x)


if __name__ == "__main__":
    key = jax.random.PRNGKey(0)
    # Small NCHW-style input consistent with the module (it works on any shape).
    x = jax.random.normal(key, (2, 4, 16, 16), dtype=jnp.float32)

    n_unit = x.size
    # Deterministic mask_index (flat positions that are KEPT by MaskLayer).
    mask_index = jnp.arange(0, n_unit, 7, dtype=jnp.int32)

    layer = MaskLayer(mask_index)
    out = jax.block_until_ready(layer(x))
    out2 = jax.block_until_ready(layer(x))   # second call reuses the cached keep-mask plan

    # Pure-JAX reference (same semantics as the PyTorch module).
    keep_ref = jnp.zeros((n_unit,), dtype=jnp.bool_).at[mask_index].set(True)
    ref = jnp.where(keep_ref, x.reshape(-1), jnp.zeros((), x.dtype)).reshape(x.shape)
    assert jnp.array_equal(out, ref), "mismatch vs reference"
    assert jnp.array_equal(out2, ref), "mismatch vs reference (cached plan)"

    print("KERNEL_OK")
</pallas_src>

<mosaic_0001>
module attributes {stable_mosaic.version = 11 : i64} {
  func.func @_mask_kernel(%arg0: i32, %arg1: memref<1x2048xf32, #tpu.memory_space<vmem>>, %arg2: memref<1x2048xi8, #tpu.memory_space<vmem>>, %arg3: memref<1x2048xf32, #tpu.memory_space<vmem>>) attributes {dimension_semantics = [#tpu.dimension_semantics<parallel>], iteration_bounds = array<i64: 1>, scalar_prefetch = 0 : i64, scratch_operands = 0 : i64, tpu.core_type = #tpu.core_type<tc>, window_params = [{transform_indices = @transform_0, window_bounds = array<i64: 1, 2048>}, {transform_indices = @transform_1, window_bounds = array<i64: 1, 2048>}, {transform_indices = @transform_2, window_bounds = array<i64: 1, 2048>}]} {
    %c0 = arith.constant 0 : index
    %c0_0 = arith.constant 0 : index
    %0 = vector.load %arg1[%c0, %c0_0] : memref<1x2048xf32, #tpu.memory_space<vmem>>, vector<1x2048xf32>
    %c0_1 = arith.constant 0 : index
    %c0_2 = arith.constant 0 : index
    %1 = vector.load %arg2[%c0_1, %c0_2] : memref<1x2048xi8, #tpu.memory_space<vmem>>, vector<1x2048xi8>
    %c0_i8 = arith.constant 0 : i8
    %2 = vector.broadcast %c0_i8 : i8 to vector<1x2048xi8>
    %3 = arith.cmpi ne, %1, %2 : vector<1x2048xi8>
    %cst = arith.constant 0.000000e+00 : f32
    %4 = vector.broadcast %cst : f32 to vector<1x2048xf32>
    %5 = arith.select %3, %0, %4 : vector<1x2048xi1>, vector<1x2048xf32>
    %c0_3 = arith.constant 0 : index
    %c0_4 = arith.constant 0 : index
    %6 = vector.load %arg3[%c0_3, %c0_4] : memref<1x2048xf32, #tpu.memory_space<vmem>>, vector<1x2048xf32>
    tpu.vector_store %arg3[%c0_3, %c0_4], %5 {strides = array<i32>} : memref<1x2048xf32, #tpu.memory_space<vmem>>, vector<1x2048xf32>,
    return
  }
  func.func @transform_0(%arg0: i32) -> (i32, i32) {
    %c0_i32 = arith.constant 0 : i32
    %c0_i32_0 = arith.constant 0 : i32
    return %arg0, %c0_i32 : i32, i32
  }
  func.func @transform_1(%arg0: i32) -> (i32, i32) {
    %c0_i32 = arith.constant 0 : i32
    %c0_i32_0 = arith.constant 0 : i32
    return %arg0, %c0_i32 : i32, i32
  }
  func.func @transform_2(%arg0: i32) -> (i32, i32) {
    %c0_i32 = arith.constant 0 : i32
    %c0_i32_0 = arith.constant 0 : i32
    return %arg0, %c0_i32 : i32, i32
  }
}

</mosaic_0001>

<bundles_post_ra>
// kernel: tpu_custom_call.1
= control target key start
LH: loop header
LB: loop body
LE: loop exit
PB: predicated region body
PF: predicated region fallthrough
CT: control target
= control target key end

     0   :  { %7 = vsyncpa [#allocation3], 0  ;;  %s282_s0 = inlined_call_operand.hbm [shape: f32[1,2048], index: 0, kind: input, shape index: {}]   ;;  %s283_s1 = inlined_call_operand.hbm [shape: s8[1,2048], index: 1, kind: input, shape index: {}]   ;;  %s284_s2 = inlined_call_operand.hbm [shape: f32[1,2048], index: 2, kind: output, shape index: {}]  }
   0x1   :  { %8 = vsyncpa [#allocation6], 0 }
   0x2   :  { %9 = vsyncpa [#allocation4], 0  ;;  %s253_s9 = smov [#allocation2]   ;;  %s254_s11 = smov [#allocation5]  }
   0x3   :  { %s16_s10 = sshll.u32 %s253_s9, 4  ;;  %s26_s12 = sshll.u32 %s254_s11, 4  ;;  %s17_s10 = int_to_ptr.vmem [resolvable:$true] %s16_s10  ;;  %s27_s12 = int_to_ptr.vmem [resolvable:$true] %s26_s12 }
   0x4   :  { %s195_s13 = scalar_lea.vmem %s17_s10, 256  ;;  %p200_p1 = scmp.lt.s32.totalorder %s17_s10, %s17_s10 }
   0x5   :  { %p196_p0 = scmp.ne.s32.totalorder %s17_s10, %s195_s13  ;;  %p201_p2 = scmp.lt.s32.totalorder %s195_s13, %s195_s13 }
   0x7   :  { %p202_p3 = por %p201_p2, %p200_p1 }
   0x9   :  { %p203_p4 = pnand %p202_p3, %p196_p0 }
   0xb   :  { %206 = shalt.err (!%p203_p4)
}
   0xc   :  { %19 = dma.hbm_to_vmem [thread:$0]  %s282_s0, 256, %s17_s10, [#allocation3]  }
   0xd   :  { %s215_s16 = scalar_lea.vmem %s27_s12, 256  ;;  %p220_p6 = scmp.lt.s32.totalorder %s27_s12, %s27_s12 }
   0xe   :  { %p216_p5 = scmp.ne.s32.totalorder %s27_s12, %s215_s16  ;;  %p221_p7 = scmp.lt.s32.totalorder %s215_s16, %s215_s16 }
  0x10   :  { %p222_p8 = por %p221_p7, %p220_p6 }
  0x12   :  { %p223_p9 = pnand %p222_p8, %p216_p5 }
  0x14   :  { %226 = shalt.err (!%p223_p9)
}
  0x15   :  { %29 = dma.hbm_to_vmem [thread:$0]  %s283_s1, 256, %s27_s12, [#allocation6]  }
  0x16   :  { %247 = dma.done.wait [#allocation3], 256  }
  0x17   :  { %248 = vsyncadd [#allocation3], 4294967040 }
  0x18   :  { %249 = dma.done.wait [#allocation6], 256  }
  0x19   :  { %250 = vsyncadd [#allocation6], 4294967040  ;;  %v255_v0 = vmov 1966171168   ;;  %v73_v2 = vlaneseq  ;;  %v40_v5 = vld [vmem:[#allocation5] sm:$0xff]  ;;  %v41_v6 = vld [vmem:[#allocation5 + $0x8] sm:$0xff] }
  0x1a   :  { %v71_v1 = vunpack.c.l.s4 %v255_v0  ;;  %vm42_vm0 = vnez %v40_v5  ;;  %v256_v7 = vmov 0   ;;  %vm43_vm1 = vnez %v41_v6  ;;  %v38_v37 = vld [vmem:[#allocation2] sm:$0xff]  ;;  %s257_s0 = smov [#allocation7]   ;;  %v39_v46 = vld [vmem:[#allocation2 + $0x8] sm:$0xff] }
  0x1b   :  { %v74_v4 = vshrl.u32 %v73_v2, 7  ;;  %v44_v8 = vsel %vm42_vm0, 16843009, %v256_v7  ;;  %v45_v14 = vsel %vm43_vm1, 16843009, %v256_v7  ;;  %s172_s1 = sshll.u32 %s257_s0, 4  ;;  %s173_s1 = int_to_ptr.vmem [resolvable:$true] %s172_s1 }
  0x1c   :  { %v72_v3 = vunpack.c.0.s8 %v71_v1  ;;  %v46_v10 = vunpack.c.0.s8 %v44_v8  ;;  %v47_v11 = vunpack.c.1.s8 %v44_v8  ;;  %v48_v12 = vunpack.c.2.s8 %v44_v8  ;;  %s227_s19 = scalar_lea.vmem %s173_s1, 256  ;;  %p232_p11 = scmp.lt.s32.totalorder %s173_s1, %s173_s1 }
  0x1d   :  { %v49_v13 = vunpack.c.3.s8 %v44_v8  ;;  %v50_v23 = vunpack.c.0.s8 %v45_v14  ;;  %v51_v24 = vunpack.c.1.s8 %v45_v14  ;;  %v52_v25 = vunpack.c.2.s8 %v45_v14  ;;  %p228_p10 = scmp.ne.s32.totalorder %s173_s1, %s227_s19  ;;  %p233_p12 = scmp.lt.s32.totalorder %s227_s19, %s227_s19 }
  0x1e   :  { %v75_v9 = vsub.s32 %v72_v3, %v74_v4  ;;  %vm54_vm2 = vcmp.ne.s32.totalorder %v46_v10, 0  ;;  %vm55_vm3 = vcmp.ne.s32.totalorder %v47_v11, 0  ;;  %vm56_vm4 = vcmp.ne.s32.totalorder %v48_v12, 0 }
  0x1f   :  { %vm57_vm5 = vcmp.ne.s32.totalorder %v49_v13, 0  ;;  %v62_v15 = vsel %vm54_vm2, 1, %v256_v7  ;;  %v63_v16 = vsel %vm55_vm3, 1, %v256_v7  ;;  %v64_v17 = vsel %vm56_vm4, 1, %v256_v7  ;;  %p234_p13 = por %p233_p12, %p232_p11 }
  0x20   :  { %v65_v18 = vsel %vm57_vm5, 1, %v256_v7  ;;  %v76_v19 = vrot.slane %v62_v15, %v75_v9  ;;  %v83_v20 = vrot.slane %v63_v16, %v75_v9  ;;  %v90_v21 = vrot.slane %v64_v17, %v75_v9 }
  0x21   :  { %v97_v22 = vrot.slane %v65_v18, %v75_v9  ;;  %v53_v26 = vunpack.c.3.s8 %v45_v14  ;;  %vm58_vm6 = vcmp.ne.s32.totalorder %v50_v23, 0  ;;  %vm59_vm7 = vcmp.ne.s32.totalorder %v51_v24, 0  ;;  %p235_p0 = pnand %p234_p13, %p228_p10 }
  0x22   :  { %v98_v27 = vcombine.low %v76_v19, %v83_v20  ;;  %vm60_vm8 = vcmp.ne.s32.totalorder %v52_v25, 0  ;;  %v66_v31 = vsel %vm58_vm6, 1, %v256_v7  ;;  %v67_v32 = vsel %vm59_vm7, 1, %v256_v7 }
  0x23   :  { %v99_v28 = vcombine.low %v90_v21, %v97_v22  ;;  %vm61_vm9 = vcmp.ne.s32.totalorder %v53_v26, 0  ;;  %v68_v33 = vsel %vm60_vm8, 1, %v256_v7  ;;  %v121_v35 = vrot.slane %v66_v31, %v75_v9 }
  0x24   :  { %v106_v29 = vrot.slane %v98_v27, %v75_v9  ;;  %v69_v34 = vsel %vm61_vm9, 1, %v256_v7  ;;  %v128_v36 = vrot.slane %v67_v32, %v75_v9  ;;  %v135_v39 = vrot.slane %v68_v33, %v75_v9 }
  0x25   :  { %v113_v30 = vrot.slane %v99_v28, %v75_v9  ;;  %v142_v40 = vrot.slane %v69_v34, %v75_v9 }
  0x26   :  { %v143_v41 = vcombine.low %v121_v35, %v128_v36 }
  0x27   :  { %v114_v38 = vcombine.low %v106_v29, %v113_v30  ;;  %v144_v42 = vcombine.low %v135_v39, %v142_v40 }
  0x28   :  { %v151_v44 = vrot.slane %v143_v41, %v75_v9 }
  0x29   :  { %vm160_vm10 = vcmp.ne.s32.totalorder %v114_v38, 0  ;;  %v158_v45 = vrot.slane %v144_v42, %v75_v9 }
  0x2a   :  { %v162_v43 = vsel %vm160_vm10, %v38_v37, 0.0 }
  0x2b   :  { %164 = vst [vmem:[#allocation7] sm:$0xff] %v162_v43  ;;  %v159_v47 = vcombine.low %v151_v44, %v158_v45 }
  0x2d   :  { %vm161_vm11 = vcmp.ne.s32.totalorder %v159_v47, 0 }
  0x2e   :  { %v163_v48 = vsel %vm161_vm11, %v39_v46, 0.0 }
  0x2f   :  { %165 = vst [vmem:[#allocation7 + $0x8] sm:$0xff] %v163_v48 }
  0x30   :  { %238 = shalt.err (!%p235_p0)
}
  0x31   :  { %175 = dma.vmem_to_hbm [thread:$0]  %s173_s1, 256, %s284_s2, [#allocation4]  }
  0x32   :  { %251 = dma.done.wait [#allocation4], 256  }
  0x33   :  { %252 = vsyncadd [#allocation4], 4294967040 }
  0x34   :  { %179 = vsyncpa [#allocation3], 1 }
  0x35   :  { %180 = vsyncpa [#allocation6], 1 }
  0x36   :  { %181 = vsyncpa [#allocation4], 1 }

</bundles_post_ra>
